<compile_context>
chip_gen: v5e
topology: v5e:2x2
jax: 0.10.0
libtpu: 0.0.40
codegen_flags: <defaults>
</compile_context>

<pallas_src>
import jax
import jax.numpy as jnp
from jax.experimental import pallas as pl
from jax.experimental.pallas import tpu as pltpu


def _avgpool_kernel(x_ref, p_ref, o_ref):
    # x_ref: (TR, TN*k) contiguous slice of the flattened (R, L_used) input.
    # p_ref: (TN*k, TN) constant block-averaging tile (includes the 1/k).
    # o_ref: (TR, TN) output tile.  One MXU matmul per (row, col) grid point.
    o_ref[...] = jnp.dot(
        x_ref[...], p_ref[...], preferred_element_type=jnp.float32
    ).astype(o_ref.dtype)


def _cdiv(a, b):
    return -(-a // b)


def _round_up(a, b):
    return _cdiv(a, b) * b


def _pick_tn(l_out, k):
    """Output-column tile.  Multiple of 128 (256 preferred for v6e/v7x MXU),
    capped so the matching x slice (TN*k columns) stays modest; otherwise use
    the full extent (satisfies the (8,128) rule by equaling the array dim)."""
    if l_out % 128 != 0:
        return l_out
    for tn in (256, 128):
        if l_out % tn == 0 and tn * k <= 4096:
            return tn
    return 128 if l_out % 128 == 0 else l_out


def _pick_tr(r, x_block_row_bytes):
    """Row tile (multiple of 8 or full extent).  Caps the x block at ~4 MiB,
    aims for >=2 row grid steps (v7x megacore), and avoids the padding cliff
    by sizing TR from cdiv(R, target_grid) instead of a fixed 512."""
    if r <= 8:
        return r, r  # full extent, no padding
    cap = max(8, ((4 << 20) // max(1, x_block_row_bytes)) // 8 * 8)
    max_tr = min(512, cap)
    target_grid = max(2, _cdiv(r, max_tr))
    tr = min(max_tr, _round_up(_cdiv(r, target_grid), 8))
    tr = max(tr, 8)
    rp = _round_up(r, tr)
    return tr, rp


def pool_forward(x, tau, step):
    """Pallas implementation of pool.forward (nn.AvgPool1d(2**(step-1))).

    x: (B, C, L).  Returns (B, C, L // 2**(step-1)) in x.dtype.
    `tau` is accepted for signature parity but unused (as in the PyTorch
    forward)."""
    del tau  # unused in the PyTorch forward
    k = int(2 ** (step - 1))
    B, C, L = x.shape
    if L < k:
        raise ValueError(f"sequence length {L} must be >= pooling kernel {k}")

    # Fast path: kernel_size=1 (stride=1) AvgPool1d is the identity.
    if k == 1:
        return x

    L_out = L // k
    L_used = L_out * k
    R = B * C
    dtype = x.dtype
    itemsize = jnp.dtype(dtype).itemsize

    # Flatten batch*channel into a single row axis; drop the PyTorch tail.
    x2 = x[..., :L_used].reshape(R, L_used)

    # Tile sizes.
    TN = _pick_tn(L_out, k)                      # output-column tile
    TR, Rp = _pick_tr(R, TN * k * itemsize)      # row tile (+ padded rows)
    if Rp != R:
        x2 = jnp.pad(x2, ((0, Rp - R), (0, 0)))

    # Tiny reusable (TN*k, TN) block-averaging tile: column j averages rows
    # [j*k, (j+1)*k).  Same tile is used for every output block.
    win_id = (jnp.arange(TN * k, dtype=jnp.int32) // k)[:, None]   # (TN*k, 1)
    out_id = jnp.arange(TN, dtype=jnp.int32)[None, :]              # (1, TN)
    pool_tile = ((win_id == out_id).astype(dtype)) * dtype.type(1.0 / k)

    # Explicit VMEM budget: double-buffered x / out blocks + pool tile.
    x_blk = TR * TN * k * itemsize
    out_blk = TR * TN * itemsize
    pool_blk = TN * k * TN * itemsize
    working = 2 * (x_blk + out_blk + pool_blk)
    vmem_limit = int(min(64 << 20, max(2 * working, 16 << 20)))

    out2 = pl.pallas_call(
        _avgpool_kernel,
        out_shape=jax.ShapeDtypeStruct((Rp, L_out), dtype),
        grid_spec=pltpu.PrefetchScalarGridSpec(
            num_scalar_prefetch=0,
            grid=(Rp // TR, L_out // TN),
            in_specs=[
                # x columns [j*TN*k, (j+1)*TN*k) feed output columns
                # [j*TN, (j+1)*TN).
                pl.BlockSpec((TR, TN * k), lambda i, j: (i, j)),
                # One constant pooling tile reused by every grid point.
                pl.BlockSpec((TN * k, TN), lambda i, j: (0, 0)),
            ],
            out_specs=pl.BlockSpec((TR, TN), lambda i, j: (i, j)),
        ),
        compiler_params=pltpu.CompilerParams(
            dimension_semantics=("parallel", "parallel"),
            vmem_limit_bytes=vmem_limit,
        ),
    )(x2, pool_tile)

    # TODO(synk): for very small L_out (<128) the output store is lane-masked;
    # the shapes in question are tiny so this is left as-is.
    return out2[:R].reshape(B, C, L_out)


def pool_reference(x, tau, step):
    """Pure-JAX reference mirroring torch.nn.AvgPool1d(kernel_size=k)."""
    del tau
    k = int(2 ** (step - 1))
    B, C, L = x.shape
    L_out = L // k
    xt = x[:, :, : L_out * k].reshape(B, C, L_out, k)
    return jnp.mean(xt, axis=-1).astype(x.dtype)


if __name__ == "__main__":
    B, C, L = 2, 4, 16
    tau = 1.0  # unused by the forward pass

    key = jax.random.PRNGKey(0)
    x = jax.random.normal(key, (B, C, L), jnp.float32)

    # Exercise several pooling kernel sizes: step=1 -> k=1 (identity fast
    # path), step=2 -> k=2, step=3 -> k=4.
    for step in (1, 2, 3):
        out = pool_forward(x, tau, step)
        out = jax.block_until_ready(out)
        ref = pool_reference(x, tau, step)
        assert out.shape == ref.shape, (out.shape, ref.shape)
        assert out.dtype == ref.dtype, (out.dtype, ref.dtype)
        assert jnp.allclose(out, ref, atol=1e-6, rtol=1e-6), (
            f"mismatch at step={step}: "
            f"max err {float(jnp.max(jnp.abs(out - ref)))}")

    print("KERNEL_OK")
</pallas_src>

<mosaic_0001>
module attributes {stable_mosaic.version = 11 : i64} {
  func.func @_avgpool_kernel(%arg0: i32, %arg1: i32, %arg2: memref<8x16xf32, #tpu.memory_space<vmem>>, %arg3: memref<16x8xf32, #tpu.memory_space<vmem>>, %arg4: memref<8x8xf32, #tpu.memory_space<vmem>>) attributes {dimension_semantics = [#tpu.dimension_semantics<parallel>, #tpu.dimension_semantics<parallel>], iteration_bounds = array<i64: 1, 1>, scalar_prefetch = 0 : i64, scratch_operands = 0 : i64, tpu.core_type = #tpu.core_type<tc>, window_params = [{transform_indices = @transform_0, window_bounds = array<i64: 8, 16>}, {pipeline_mode = #tpu.pipeline_mode<synchronous>, transform_indices = @transform_1, window_bounds = array<i64: 16, 8>}, {transform_indices = @transform_2, window_bounds = array<i64: 8, 8>}]} {
    %c0 = arith.constant 0 : index
    %c0_0 = arith.constant 0 : index
    %0 = vector.load %arg2[%c0, %c0_0] : memref<8x16xf32, #tpu.memory_space<vmem>>, vector<8x16xf32>
    %c0_1 = arith.constant 0 : index
    %c0_2 = arith.constant 0 : index
    %1 = vector.load %arg3[%c0_1, %c0_2] : memref<16x8xf32, #tpu.memory_space<vmem>>, vector<16x8xf32>
    %cst = arith.constant dense<0.000000e+00> : vector<8x8xf32>
    %2 = tpu.matmul %0, %1, %cst {dimension_numbers = #tpu.dot_dimension_numbers<[1], [0], [0], [1], [0, 0, 1, 1], [], []>} : vector<8x16xf32>, vector<16x8xf32>, vector<8x8xf32> -> vector<8x8xf32>
    %c0_3 = arith.constant 0 : index
    %c0_4 = arith.constant 0 : index
    %3 = vector.load %arg4[%c0_3, %c0_4] : memref<8x8xf32, #tpu.memory_space<vmem>>, vector<8x8xf32>
    tpu.vector_store %arg4[%c0_3, %c0_4], %2 {strides = array<i32>} : memref<8x8xf32, #tpu.memory_space<vmem>>, vector<8x8xf32>,
    return
  }
  func.func @transform_0(%arg0: i32, %arg1: i32) -> (i32, i32) {
    %c0_i32 = arith.constant 0 : i32
    return %arg0, %arg1 : i32, i32
  }
  func.func @transform_1(%arg0: i32, %arg1: i32) -> (i32, i32) {
    %c0_i32 = arith.constant 0 : i32
    %c0_i32_0 = arith.constant 0 : i32
    %c0_i32_1 = arith.constant 0 : i32
    return %c0_i32, %c0_i32_0 : i32, i32
  }
  func.func @transform_2(%arg0: i32, %arg1: i32) -> (i32, i32) {
    %c0_i32 = arith.constant 0 : i32
    return %arg0, %arg1 : i32, i32
  }
}

</mosaic_0001>

<bundles_post_ra>
// kernel: tpu_custom_call.1
= control target key start
LH: loop header
LB: loop body
LE: loop exit
PB: predicated region body
PF: predicated region fallthrough
CT: control target
= control target key end

     0   :  { %vm15_vm0 = vcmask 130048   ;;  %s113_s0 = inlined_call_operand.vmem [shape: f32[8,16], index: 0, kind: input, shape index: {}]   ;;  %s114_s1 = inlined_call_operand.vmem [shape: f32[16,8], index: 1, kind: input, shape index: {}]   ;;  %s115_s2 = inlined_call_operand.hbm [shape: f32[8,8], index: 2, kind: output, shape index: {}]  }
   0x1   :  { %v14_v0 = vld [vmem:[%s114_s1 + $0x8] sm:$0xff]  ;;  %v13_v1 = vld [vmem:[%s114_s1] sm:$0xff] }
   0x2   :  { %33 = vmatpush.msra.mxu0 %v14_v0  ;;  %v12_v2 = vld [vmem:[%s113_s0] sm:$0xff] }
   0x3   :  { %7 = vsyncpa [#allocation3], 0  ;;  %s85_s15 = smov [#allocation2]   ;;  %s48_s19 = sshll.u32 %s115_s2, 4  ;;  %vm39_vm1 = vcmask 64512   ;;  %s49_s19 = int_to_ptr.hbm [resolvable:$true] %s48_s19 }
   0x4   :  { %34 = vmatpush.msra.mxu0 %v13_v1  ;;  %s46_s16 = sshll.u32 %s85_s15, 4  ;;  %s47_s16 = int_to_ptr.vmem [resolvable:$true] %s46_s16 }
   0x5   :  { %57 = vmatmul.msk.f32.vlgmr.msra.gmra.mxu0 %vm15_vm0, %v12_v2 }
  0x82   :  { %v36_v3 = vpop.f32.mrf.mxu0 }
  0x83   :  { %40 = vst.msk [vmem:[#allocation2] sm:$0xff] %vm39_vm1, %v36_v3 }
  0x84   :  { %51 = dma.vmem_to_hbm [thread:$0]  %s47_s16, 128, %s49_s19, [#allocation3]  }
  0x85   :  { %83 = dma.done.wait [#allocation3], 128  }
  0x86   :  { %84 = vsyncadd [#allocation3], 4294967168 }
  0x87   :  { %56 = vsyncpa [#allocation3], 1 }

</bundles_post_ra>
